<compile_context>
chip_gen: v5e
topology: v5e:2x2
jax: 0.10.0
libtpu: 0.0.40
codegen_flags: <defaults>
</compile_context>

<pallas_src>
import functools

import jax
import jax.numpy as jnp
from jax.experimental import pallas as pl
from jax.experimental.pallas import tpu as pltpu


def _cdiv(a, b):
    return (a + b - 1) // b


def _vmem_limit_bytes():
    """Per-chip VMEM limit: leave headroom on v7x (64 MiB physical per TC),
    use more of v5e/v6e's 128 MiB."""
    try:
        phys = int(pltpu.get_tpu_info().vmem_capacity_bytes)
    except Exception:
        phys = 64 * 1024 * 1024
    return 64 * 1024 * 1024 if phys >= 128 * 1024 * 1024 else 48 * 1024 * 1024


def _choose_tile_rows(batch, feat, itemsize, vmem_budget_bytes, max_tile_rows):
    """Rows per block: target ~4 MiB per input block (2 inputs x 2 pipeline
    buffers must stay under the VMEM budget), multiple of 8, or the full
    batch (a full-extent block dim is always legal)."""
    row_bytes = feat * itemsize
    target_block_bytes = min(4 * 1024 * 1024, vmem_budget_bytes // 4)
    tb = max(8, (target_block_bytes // row_bytes) // 8 * 8)
    if max_tile_rows is not None:
        tb = min(tb, max(8, (max_tile_rows // 8) * 8))
    if tb >= batch:
        return batch
    return tb


def _mv_laplace_kl_kernel(pm_ref, ps_ref, prior_ref, out_ref, *,
                          batch, tile_rows, ragged):
    i = pl.program_id(0)

    @pl.when(i == 0)
    def _init():
        out_ref[...] = jnp.zeros_like(out_ref)

    pm = pm_ref[...].astype(jnp.float32)        # (TB, D) posterior loc
    ps = ps_ref[...].astype(jnp.float32)        # (TB, D) posterior scale
    qm = prior_ref[0:1, :]                      # (1, D) prior loc
    qls_m1 = prior_ref[1:2, :]                  # (1, D) prior log-scale - 1
    qinv = prior_ref[2:3, :]                    # (1, D) 1 / prior scale

    diff = jnp.abs(pm - qm)
    inv_ps = pl.reciprocal(ps, approx=True)     # EUP slot
    kl = ((qls_m1 - jnp.log(ps))                # == -log(ps/qs) - 1
          + diff * qinv                         # == diff / qs
          + (ps * qinv) * jnp.exp(-diff * inv_ps))

    if ragged:
        last = pl.num_programs(0) - 1

        @pl.when(i != last)
        def _acc_full():
            out_ref[...] += jnp.sum(kl, keepdims=True)

        @pl.when(i == last)
        def _acc_masked():                      # mask only the ragged tile
            rows = (jax.lax.broadcasted_iota(jnp.int32, kl.shape, 0)
                    + i * tile_rows)
            out_ref[...] += jnp.sum(jnp.where(rows < batch, kl, 0.0),
                                    keepdims=True)
    else:
        out_ref[...] += jnp.sum(kl, keepdims=True)


def multivariate_laplace_kl(post_mean, post_std, prior_mean, prior_logscale,
                            *, max_tile_rows=None):
    """mean_over_batch(KL(Independent(Laplace(post_mean, post_std),1) || prior))."""
    B, D = post_mean.shape
    itemsize = jnp.dtype(post_mean.dtype).itemsize

    vmem_limit = _vmem_limit_bytes()
    vmem_budget = vmem_limit - 16 * 1024 * 1024
    tb = _choose_tile_rows(B, D, itemsize, vmem_budget, max_tile_rows)
    nb = _cdiv(B, tb)
    ragged = (B % tb) != 0

    # Prior-side math hoisted to the wrapper and packed into one (3, D) block:
    # row 0 = prior mean, row 1 = prior_logscale - 1 (folds the "-1" term),
    # row 2 = 1 / prior scale.  Tiny arrays; done once per call.
    qls = jnp.asarray(prior_logscale, jnp.float32).reshape(D)
    prior_packed = jnp.stack(
        [jnp.asarray(prior_mean, jnp.float32).reshape(D),
         qls - 1.0,
         jnp.exp(-qls)], axis=0)                # (3, D) f32

    kernel = functools.partial(_mv_laplace_kl_kernel,
                               batch=B, tile_rows=tb, ragged=ragged)

    out = pl.pallas_call(
        kernel,
        out_shape=jax.ShapeDtypeStruct((1, 1), jnp.float32),
        grid=(nb,),
        in_specs=[
            pl.BlockSpec((tb, D), lambda i: (i, 0)),
            pl.BlockSpec((tb, D), lambda i: (i, 0)),
            pl.BlockSpec((3, D), lambda i: (0, 0)),     # resident prior block
        ],
        out_specs=pl.BlockSpec((1, 1), lambda i: (0, 0)),  # resident accumulator
        compiler_params=pltpu.CompilerParams(
            dimension_semantics=("arbitrary",),
            vmem_limit_bytes=vmem_limit,
        ),
    )(post_mean, post_std, prior_packed)

    return out[0, 0] / B


def _reference_kl(post_mean, post_std, prior_mean, prior_logscale):
    """Pure-JAX reference mirroring torch's _kl_laplace_laplace + Independent + mean."""
    qs = jnp.exp(prior_logscale)[None, :]
    qm = prior_mean[None, :]
    scale_ratio = post_std / qs
    loc_abs_diff = jnp.abs(post_mean - qm)
    kl = (-jnp.log(scale_ratio) + loc_abs_diff / qs
          + scale_ratio * jnp.exp(-loc_abs_diff / post_std) - 1.0)
    return jnp.mean(jnp.sum(kl, axis=-1))


if __name__ == "__main__":
    # Module __init__: mean=0.0, scale=0.1, shape=D  (deterministic init)
    D = 32
    B = 2
    prior_mean = jnp.ones((D,), dtype=jnp.float32) * 0.0
    prior_logscale = jnp.log(jnp.ones((D,), dtype=jnp.float32) * 0.1)

    key = jax.random.PRNGKey(0)
    k1, k2 = jax.random.split(key)
    post_mean = jax.random.normal(k1, (B, D), dtype=jnp.float32)
    post_std = jnp.abs(jax.random.normal(k2, (B, D), dtype=jnp.float32)) * 0.2 + 0.05

    kl = multivariate_laplace_kl(post_mean, post_std, prior_mean, prior_logscale)
    kl = jax.block_until_ready(kl)
    ref = _reference_kl(post_mean, post_std, prior_mean, prior_logscale)
    # slightly relaxed tolerance: approx reciprocal inside the kernel
    assert jnp.allclose(kl, ref, rtol=2e-3, atol=1e-2), (kl, ref)

    # Also exercise the multi-tile path with a ragged last tile (B % tile != 0).
    B2 = 20
    k3, k4 = jax.random.split(k2)
    pm2 = jax.random.normal(k3, (B2, D), dtype=jnp.float32)
    ps2 = jnp.abs(jax.random.normal(k4, (B2, D), dtype=jnp.float32)) * 0.2 + 0.05
    kl2 = multivariate_laplace_kl(pm2, ps2, prior_mean, prior_logscale,
                                  max_tile_rows=8)
    kl2 = jax.block_until_ready(kl2)
    ref2 = _reference_kl(pm2, ps2, prior_mean, prior_logscale)
    assert jnp.allclose(kl2, ref2, rtol=2e-3, atol=1e-2), (kl2, ref2)

    print("KERNEL_OK")
</pallas_src>

<mosaic_0001>
module attributes {stable_mosaic.version = 11 : i64} {
  func.func @_mv_laplace_kl_kernel(%arg0: i32, %arg1: memref<2x32xf32, #tpu.memory_space<vmem>>, %arg2: memref<2x32xf32, #tpu.memory_space<vmem>>, %arg3: memref<3x32xf32, #tpu.memory_space<vmem>>, %arg4: memref<1x1xf32, #tpu.memory_space<vmem>>) attributes {dimension_semantics = [#tpu.dimension_semantics<arbitrary>], iteration_bounds = array<i64: 1>, scalar_prefetch = 0 : i64, scratch_operands = 0 : i64, tpu.core_type = #tpu.core_type<tc>, window_params = [{transform_indices = @transform_0, window_bounds = array<i64: 2, 32>}, {transform_indices = @transform_1, window_bounds = array<i64: 2, 32>}, {pipeline_mode = #tpu.pipeline_mode<synchronous>, transform_indices = @transform_2, window_bounds = array<i64: 3, 32>}, {pipeline_mode = #tpu.pipeline_mode<synchronous>, transform_indices = @transform_3, window_bounds = array<i64: 1, 1>}]} {
    %c0_i32 = arith.constant 0 : i32
    %0 = arith.cmpi eq, %arg0, %c0_i32 : i32
    %1 = arith.extui %0 : i1 to i32
    %c0_i32_0 = arith.constant 0 : i32
    %2 = arith.cmpi ne, %1, %c0_i32_0 : i32
    scf.if %2 {
      %cst_13 = arith.constant 0.000000e+00 : f32
      %34 = vector.broadcast %cst_13 : f32 to vector<1x1xf32>
      %c0_14 = arith.constant 0 : index
      %c0_15 = arith.constant 0 : index
      %35 = vector.load %arg4[%c0_14, %c0_15] : memref<1x1xf32, #tpu.memory_space<vmem>>, vector<1x1xf32>
      tpu.vector_store %arg4[%c0_14, %c0_15], %34 {strides = array<i32>} : memref<1x1xf32, #tpu.memory_space<vmem>>, vector<1x1xf32>,
    } else {
    }
    %c0 = arith.constant 0 : index
    %c0_1 = arith.constant 0 : index
    %3 = vector.load %arg1[%c0, %c0_1] : memref<2x32xf32, #tpu.memory_space<vmem>>, vector<2x32xf32>
    %c0_2 = arith.constant 0 : index
    %c0_3 = arith.constant 0 : index
    %4 = vector.load %arg2[%c0_2, %c0_3] : memref<2x32xf32, #tpu.memory_space<vmem>>, vector<2x32xf32>
    %c0_4 = arith.constant 0 : index
    %c0_5 = arith.constant 0 : index
    %5 = vector.load %arg3[%c0_4, %c0_5] : memref<3x32xf32, #tpu.memory_space<vmem>>, vector<1x32xf32>
    %c1 = arith.constant 1 : index
    %c0_6 = arith.constant 0 : index
    %6 = vector.load %arg3[%c1, %c0_6] : memref<3x32xf32, #tpu.memory_space<vmem>>, vector<1x32xf32>
    %c2 = arith.constant 2 : index
    %c0_7 = arith.constant 0 : index
    %7 = vector.load %arg3[%c2, %c0_7] : memref<3x32xf32, #tpu.memory_space<vmem>>, vector<1x32xf32>
    %8 = vector.broadcast %5 : vector<1x32xf32> to vector<2x32xf32>
    %9 = arith.subf %3, %8 : vector<2x32xf32>
    %10 = math.absf %9 : vector<2x32xf32>
    %11 = tpu.reciprocal %4 {approx = true} : vector<2x32xf32> -> vector<2x32xf32>
    %12 = math.log %4 : vector<2x32xf32>
    %13 = vector.broadcast %6 : vector<1x32xf32> to vector<2x32xf32>
    %14 = arith.subf %13, %12 : vector<2x32xf32>
    %15 = vector.broadcast %7 : vector<1x32xf32> to vector<2x32xf32>
    %16 = arith.mulf %10, %15 : vector<2x32xf32>
    %17 = arith.addf %14, %16 : vector<2x32xf32>
    %18 = vector.broadcast %7 : vector<1x32xf32> to vector<2x32xf32>
    %19 = arith.mulf %4, %18 : vector<2x32xf32>
    %cst = arith.constant 0.000000e+00 : f32
    %20 = vector.broadcast %cst : f32 to vector<2x32xf32>
    %21 = arith.subf %20, %10 : vector<2x32xf32>
    %22 = arith.mulf %21, %11 : vector<2x32xf32>
    %23 = math.exp %22 : vector<2x32xf32>
    %24 = arith.mulf %19, %23 : vector<2x32xf32>
    %25 = arith.addf %17, %24 : vector<2x32xf32>
    %c0_8 = arith.constant 0 : index
    %c0_9 = arith.constant 0 : index
    %26 = vector.load %arg4[%c0_8, %c0_9] : memref<1x1xf32, #tpu.memory_space<vmem>>, vector<1x1xf32>
    %27 = vector.shape_cast %25 : vector<2x32xf32> to vector<1x2x32xf32>
    %cst_10 = arith.constant dense<0.000000e+00> : vector<1xf32>
    %28 = vector.multi_reduction <add>, %27, %cst_10 [1, 2] : vector<1x2x32xf32> to vector<1xf32>
    %29 = vector.shape_cast %28 : vector<1xf32> to vector<1x1x1xf32>
    %30 = vector.extract %29[0, 0, 0] : f32 from vector<1x1x1xf32>
    %31 = vector.broadcast %30 : f32 to vector<1x1xf32>
    %32 = arith.addf %26, %31 : vector<1x1xf32>
    %c0_11 = arith.constant 0 : index
    %c0_12 = arith.constant 0 : index
    %33 = vector.load %arg4[%c0_11, %c0_12] : memref<1x1xf32, #tpu.memory_space<vmem>>, vector<1x1xf32>
    tpu.vector_store %arg4[%c0_11, %c0_12], %32 {strides = array<i32>} : memref<1x1xf32, #tpu.memory_space<vmem>>, vector<1x1xf32>,
    return
  }
  func.func @transform_0(%arg0: i32) -> (i32, i32) {
    %c0_i32 = arith.constant 0 : i32
    %c0_i32_0 = arith.constant 0 : i32
    return %arg0, %c0_i32 : i32, i32
  }
  func.func @transform_1(%arg0: i32) -> (i32, i32) {
    %c0_i32 = arith.constant 0 : i32
    %c0_i32_0 = arith.constant 0 : i32
    return %arg0, %c0_i32 : i32, i32
  }
  func.func @transform_2(%arg0: i32) -> (i32, i32) {
    %c0_i32 = arith.constant 0 : i32
    %c0_i32_0 = arith.constant 0 : i32
    %c0_i32_1 = arith.constant 0 : i32
    return %c0_i32, %c0_i32_0 : i32, i32
  }
  func.func @transform_3(%arg0: i32) -> (i32, i32) {
    %c0_i32 = arith.constant 0 : i32
    %c0_i32_0 = arith.constant 0 : i32
    %c0_i32_1 = arith.constant 0 : i32
    return %c0_i32, %c0_i32_0 : i32, i32
  }
}

</mosaic_0001>

<bundles_post_ra>
// kernel: tpu_custom_call.1
= control target key start
LH: loop header
LB: loop body
LE: loop exit
PB: predicated region body
PF: predicated region fallthrough
CT: control target
= control target key end

     0   :  { %8 = vsyncpa [#allocation3], 0  ;;  %s276_s0 = inlined_call_operand.hbm [shape: f32[2,32], index: 0, kind: input, shape index: {}]   ;;  %s277_s1 = inlined_call_operand.hbm [shape: f32[2,32], index: 1, kind: input, shape index: {}]   ;;  %s278_s2 = inlined_call_operand.hbm [shape: f32[3,32], index: 2, kind: input, shape index: {}]   ;;  %s279_s3 = inlined_call_operand.hbm [shape: f32[1,1], index: 3, kind: output, shape index: {}]  }
   0x1   :  { %9 = vsyncpa [#allocation6], 0  ;;  %s27_s14 = sshll.u32 %s277_s1, 4  ;;  %s28_s14 = int_to_ptr.hbm [resolvable:$true] %s27_s14 }
   0x2   :  { %10 = vsyncpa [#allocation4], 0  ;;  %s237_s15 = smov [#allocation5]   ;;  %s16_s19 = sshll.u32 %s276_s0, 4  ;;  %s17_s19 = int_to_ptr.hbm [resolvable:$true] %s16_s19 }
   0x3   :  { %s29_s16 = sshll.u32 %s237_s15, 4  ;;  %s238_s20 = smov [#allocation2]   ;;  %s30_s16 = int_to_ptr.vmem [resolvable:$true] %s29_s16 }
   0x4   :  { %32 = dma.hbm_to_vmem [thread:$0]  %s28_s14, 32, %s30_s16, [#allocation6]  }
   0x5   :  { %s18_s21 = sshll.u32 %s238_s20, 4  ;;  %s38_s24 = sshll.u32 %s278_s2, 4  ;;  %s19_s21 = int_to_ptr.vmem [resolvable:$true] %s18_s21  ;;  %s39_s24 = int_to_ptr.hbm [resolvable:$true] %s38_s24 }
   0x6   :  { %21 = dma.hbm_to_vmem [thread:$0]  %s17_s19, 32, %s19_s21, [#allocation3]  }
   0x7   :  { %s239_s1 = smov [#allocation7]  }
   0x8   :  { %s40_s25 = sshll.u32 %s239_s1, 4  ;;  %s41_s25 = int_to_ptr.vmem [resolvable:$true] %s40_s25 }
   0x9   :  { %43 = dma.hbm_to_vmem [thread:$0]  %s39_s24, 64, %s41_s25, [#allocation6]  }
   0xa   :  { %231 = dma.done.wait [#allocation3], 32  }
   0xb   :  { %232 = vsyncadd [#allocation3], 4294967264 }
   0xc   :  { %233 = dma.done.wait [#allocation6], 96  }
   0xd   :  { %234 = vsyncadd [#allocation6], 4294967200  ;;  %vm60_vm0 = vcmask 0   ;;  %v240_v0 = vmov 0.0   ;;  %v62_v1 = vld [vmem:[#allocation2] sm:$0x3] }
   0xe   :  { %61 = vst.msk [vmem:[#allocation8] sm:$0x1] %vm60_vm0, %v240_v0  ;;  %v63_v2 = vld [vmem:[#allocation5] sm:$0x3]  ;;  %v126_v3 = vld [vmem:[#allocation7] ss:$0 sm:$0xff] }
   0xf   :  { %129 = vrcp.f32 %v63_v2  ;;  %v68_v4 = vsub.f32 %v62_v1, %v126_v3  ;;  %v127_v11 = vld [vmem:[#allocation7 + $0x1] ss:$0 sm:$0xff]  ;;  %v128_v12 = vld [vmem:[#allocation7 + $0x2] ss:$0 sm:$0xff]  ;;  %vm86_vm1 = vcmask 254976   ;;  %s241_s0 = smov [#allocation8]  }
  0x10   :  { %131 = vlog2.f32 %v63_v2  ;;  %v78_v16 = vmul.f32 %v128_v12, %v63_v2  ;;  %s106_s2 = sshll.u32 %s241_s0, 4  ;;  %s108_s28 = sshll.u32 %s279_s3, 4  ;;  %s107_s2 = int_to_ptr.vmem [resolvable:$true] %s106_s2  ;;  %s109_s28 = int_to_ptr.hbm [resolvable:$true] %s108_s28 }
  0x11   :  { %v69_v5 = vand.u32 2147483647, %v68_v4 }
  0x13   :  { %v79_v7 = vsub.f32 0.0, %v69_v5  ;;  %v76_v15 = vmul.f32 %v128_v12, %v69_v5 }
  0x15   :  { %v130_v6 = vpop.eup %129  ;;  %v85_v29 = vld [vmem:[#allocation8] sm:$0x1] }
  0x16   :  { %v132_v8 = vpop.eup %131  ;;  %v80_v9 = vmul.f32 %v130_v6, %v79_v7 }
  0x17   :  { %v72_v10 = vmul.f32 0.6931472, %v132_v8 }
  0x18   :  { %v81_v13 = vmul.f32 1.442695, %v80_v9 }
  0x19   :  { %v74_v14 = vsub.f32 %v127_v11, %v72_v10 }
  0x1a   :  { %133 = vpow2.f32 %v81_v13 }
  0x1b   :  { %v77_v17 = vadd.f32 %v76_v15, %v74_v14 }
  0x20   :  { %v134_v18 = vpop.eup %133 }
  0x21   :  { %v83_v19 = vmul.f32 %v134_v18, %v78_v16 }
  0x23   :  { %v84_v20 = vadd.f32 %v83_v19, %v77_v17 }
  0x25   :  { %v87_v21 = vsel %vm86_vm1, %v84_v20, 0.0 }
  0x26   :  { %88 = vadd.xlane.f32.xlu0 %v87_v21 }
  0x99   :  { %v89_v22 = vpop.xlane.xlu0 %88 }
  0x9a   :  { %v90_v23 = vrot.slane %v89_v22, 4 }
  0x9c   :  { %v91_v24 = vadd.f32 %v90_v23, %v89_v22 }
  0x9e   :  { %v92_v25 = vrot.slane %v91_v24, 2 }
  0xa0   :  { %v93_v26 = vadd.f32 %v92_v25, %v91_v24 }
  0xa2   :  { %v94_v27 = vrot.slane %v93_v26, 1 }
  0xa4   :  { %v95_v28 = vadd.f32 %v94_v27, %v93_v26 }
  0xa6   :  { %119 = vpush %v95_v28 }
  0xd7   :  { %s120_s29 = spop %119 }
  0xd8   :  { %v97_v30 = vstv %s120_s29 }
  0xd9   :  { %v98_v31 = vadd.f32 %v97_v30, %v85_v29 }
  0xdb   :  { %100 = vst.msk [vmem:[#allocation8] sm:$0x1] %vm60_vm0, %v98_v31 }
  0xdc   :  { %111 = dma.vmem_to_hbm [thread:$0]  %s107_s2, 16, %s109_s28, [#allocation4]  }
  0xdd   :  { %235 = dma.done.wait [#allocation4], 16  }
  0xde   :  { %236 = vsyncadd [#allocation4], 4294967280 }
  0xdf   :  { %116 = vsyncpa [#allocation3], 1 }
  0xe0   :  { %117 = vsyncpa [#allocation6], 1 }
  0xe1   :  { %118 = vsyncpa [#allocation4], 1 }

</bundles_post_ra>
